<compile_context>
chip_gen: v5e
topology: v5e:2x2
jax: 0.10.0
libtpu: 0.0.40
codegen_flags: <defaults>
</compile_context>

<pallas_src>
import functools

import jax
import jax.numpy as jnp
from jax import lax
from jax.experimental import pallas as pl
from jax.experimental.pallas import tpu as pltpu


def _conv_bn_relu_kernel(x_ref, w_ref, shift_ref, o_ref, *, kh_taps, stride, th, wo_p):
    # x_ref:     (S, THp*Wo_p, KW*Cin)  halo'd, KW-folded, stride-phase-decimated rows
    # w_ref:     (KH, KW*Cin, Coutp)    conv weights with BN scale folded in
    # shift_ref: (1, Coutp)             folded BN shift = beta + (conv_b - mean)*scale, f32
    # o_ref:     (TH*Wo_p, Coutp)       output rows for this (image, row-tile)
    tr = th * wo_p
    coutp = o_ref.shape[-1]

    acc = jnp.zeros((tr, coutp), jnp.float32)
    # Static unroll over the KH taps; each tap is one MXU dot with K = KW*Cin.
    # The slice start is a static multiple of Wo_p (Wo_p % 8 == 0) so every tap is an
    # aligned, unit-stride sublane window: no relayout copies, no strided loads.
    for kh in range(kh_taps):
        phase = kh % stride
        off = (kh // stride) * wo_p
        patch = x_ref[phase, off:off + tr, :]                 # (TR, KW*Cin)
        acc = acc + jnp.dot(patch, w_ref[kh],
                            preferred_element_type=jnp.float32)

    y = jnp.maximum(acc + shift_ref[...], 0.0)                # BN shift + ReLU
    o_ref[...] = y.astype(o_ref.dtype)


def enhanced_conv_block(x_nchw, conv_w, conv_b, gamma, beta,
                        running_mean, running_var, *, stride=1, eps=1e-5,
                        compute_dtype=jnp.bfloat16, row_tile=None):
    """Eval-mode forward of EnhancedConvBlock. Input/output NCHW, output in x dtype."""
    N, Cin, H, W = x_nchw.shape
    Cout, Cin2, KH, KW = conv_w.shape
    assert Cin2 == Cin and KH == KW, "square kernels only (as in the module)"
    S = int(stride)
    pad = KH // 2                                   # padding = kernel_size // 2
    Ho = (H + 2 * pad - KH) // S + 1
    Wo = (W + 2 * pad - KW) // S + 1
    KWC = KW * Cin

    LANE, SUB = 128, 8
    Coutp = pl.cdiv(Cout, LANE) * LANE              # lane-dense output channels
    Wo_p = pl.cdiv(Wo, SUB) * SUB                   # keeps every tap slice sublane-aligned

    # Output-row tile height: cap the f32 register accumulator at ~128 KiB.
    if row_tile is None:
        budget_rows = max(Wo_p, min(512, (128 * 1024) // (4 * Coutp)))
        TH = max(1, budget_rows // Wo_p)
    else:
        TH = int(row_tile)
    TH = max(1, min(TH, Ho))
    NT = pl.cdiv(Ho, TH)                            # number of row tiles
    Ho_p = NT * TH
    khdiv = (KH - 1) // S
    THp = TH + khdiv                                # halo'd rows per tile (per phase)
    Qp = Ho_p + khdiv                               # rows needed per stride-phase plane
    TR = TH * Wo_p                                  # output rows per grid step

    # ---------------- wrapper-side layout (plain JAX, fused by XLA) ----------------
    x = jnp.transpose(x_nchw, (0, 2, 3, 1)).astype(compute_dtype)        # NHWC
    # Defensive bottom pad so every wrapper slice below is statically in-bounds.
    bot = max(pad, Qp * S - (H + pad))
    xp = jnp.pad(x, ((0, 0), (pad, bot), (pad, pad), (0, 0)))
    Hp2 = xp.shape[1]

    # Partial im2col over KW only: xkw[n, h, wo, kw*Cin + c] = xp[n, h, wo*S + kw, c].
    cols = [xp[:, :, kw:kw + S * (Wo - 1) + 1:S, :] for kw in range(KW)]
    xkw = jnp.stack(cols, axis=3).reshape(N, Hp2, Wo, KWC)
    if Wo_p != Wo:
        xkw = jnp.pad(xkw, ((0, 0), (0, 0), (0, Wo_p - Wo), (0, 0)))

    # Stride-phase decimation along H: tap kh reads phase kh % S at row offset kh // S,
    # so all in-kernel accesses are unit-stride.
    phases = [xkw[:, p:p + S * (Qp - 1) + 1:S] for p in range(S)]         # (N,Qp,Wo_p,KWC)
    xph = jnp.stack(phases, axis=1)                                       # (N,S,Qp,Wo_p,KWC)

    # Halo'd row tiles (only KH-1 duplicated rows per tile), rows pre-flattened.
    tiles = [xph[:, :, t * TH:t * TH + THp] for t in range(NT)]
    xt = jnp.stack(tiles, axis=1).reshape(N, NT, S, THp * Wo_p, KWC)

    # Fold BatchNorm: scale into the weights, shift kept as a bias.
    f32 = jnp.float32
    inv_std = lax.rsqrt(running_var.astype(f32) + eps)
    scale = gamma.astype(f32) * inv_std                                   # (Cout,)
    shift = beta.astype(f32) + (conv_b.astype(f32) - running_mean.astype(f32)) * scale
    w = jnp.transpose(conv_w.astype(f32), (2, 3, 1, 0)) * scale           # (KH,KW,Cin,Cout)
    w = w.reshape(KH, KWC, Cout)
    w = jnp.pad(w, ((0, 0), (0, 0), (0, Coutp - Cout))).astype(compute_dtype)
    shift_p = jnp.pad(shift, (0, Coutp - Cout)).reshape(1, Coutp)         # f32

    kernel = functools.partial(_conv_bn_relu_kernel, kh_taps=KH, stride=S,
                               th=TH, wo_p=Wo_p)

    itemsize = jnp.dtype(compute_dtype).itemsize
    flops = 2 * N * Ho * Wo * KH * KW * Cin * Cout
    bytes_accessed = int(xt.size * itemsize + w.size * itemsize
                         + shift_p.size * 4 + N * NT * TR * Coutp * itemsize)

    # VMEM budget from the actual lane-/sublane-padded block sizes (2x = double buffer).
    def _vmem_block(shape, isz):
        lane = pl.cdiv(shape[-1], LANE) * LANE
        pack = max(1, 4 // isz)
        sub = pl.cdiv(shape[-2], SUB * pack) * SUB * pack
        lead = 1
        for d in shape[:-2]:
            lead *= d
        return lead * sub * lane * isz

    est = (2 * _vmem_block((S, THp * Wo_p, KWC), itemsize)
           + 2 * _vmem_block((TR, Coutp), itemsize)
           + 2 * _vmem_block((KH, KWC, Coutp), itemsize)
           + 2 * _vmem_block((1, Coutp), 4)
           + TR * Coutp * 4)
    # Keep well under v7x's 64 MiB physical VMEM; v5e/v6e have 128 MiB.
    vmem_limit = int(min(100 * 2**20, max(32 * 2**20, 2 * est)))

    # ---------------- hot path: fused tap-loop GEMM + BN shift + ReLU ---------------
    out = pl.pallas_call(
        kernel,
        out_shape=jax.ShapeDtypeStruct((N, NT, TR, Coutp), compute_dtype),
        grid=(N, NT),
        in_specs=[
            pl.BlockSpec((None, None, S, THp * Wo_p, KWC),
                         lambda n, t: (n, t, 0, 0, 0)),
            pl.BlockSpec((KH, KWC, Coutp), lambda n, t: (0, 0, 0)),
            pl.BlockSpec((1, Coutp), lambda n, t: (0, 0)),
        ],
        out_specs=pl.BlockSpec((None, None, TR, Coutp), lambda n, t: (n, t, 0, 0)),
        compiler_params=pltpu.CompilerParams(
            dimension_semantics=("parallel", "parallel"),
            vmem_limit_bytes=vmem_limit),
        cost_estimate=pl.CostEstimate(flops=flops, transcendentals=0,
                                      bytes_accessed=bytes_accessed),
    )(xt, w, shift_p)

    out = out.reshape(N, Ho_p, Wo_p, Coutp)[:, :Ho, :Wo, :Cout]
    out = out.astype(x_nchw.dtype)
    return jnp.transpose(out, (0, 3, 1, 2))                               # back to NCHW


def _reference(x_nchw, conv_w, conv_b, gamma, beta, running_mean, running_var,
               *, stride=1, eps=1e-5):
    pad = conv_w.shape[2] // 2
    y = lax.conv_general_dilated(
        x_nchw, conv_w, window_strides=(stride, stride),
        padding=[(pad, pad), (pad, pad)],
        dimension_numbers=("NCHW", "OIHW", "NCHW"))
    y = y + conv_b.reshape(1, -1, 1, 1)
    y = (y - running_mean.reshape(1, -1, 1, 1)) / jnp.sqrt(
        running_var.reshape(1, -1, 1, 1) + eps)
    y = y * gamma.reshape(1, -1, 1, 1) + beta.reshape(1, -1, 1, 1)
    return jnp.maximum(y, 0.0)


if __name__ == "__main__":
    in_channels, out_channels, kernel_size, dropout = 4, 8, 3, 0.1
    N, H, W = 2, 16, 16

    key = jax.random.PRNGKey(0)
    k_x, k_w, k_b, k_g, k_be = jax.random.split(key, 5)

    x = jax.random.normal(k_x, (N, in_channels, H, W), dtype=jnp.float32)
    conv_w = 0.1 * jax.random.normal(
        k_w, (out_channels, in_channels, kernel_size, kernel_size), jnp.float32)
    conv_b = 0.1 * jax.random.normal(k_b, (out_channels,), jnp.float32)
    gamma = 1.0 + 0.1 * jax.random.normal(k_g, (out_channels,), jnp.float32)
    beta = 0.1 * jax.random.normal(k_be, (out_channels,), jnp.float32)
    running_mean = jnp.zeros((out_channels,), jnp.float32)
    running_var = jnp.ones((out_channels,), jnp.float32)

    params = (x, conv_w, conv_b, gamma, beta, running_mean, running_var)

    # 1) f32 compute, stride=1, small forced row tile: exercises halo'd row tiling,
    #    Ho padding and the multi-step parallel grid. Tight numerical check.
    ref1 = _reference(*params, stride=1)
    f1 = jax.jit(functools.partial(enhanced_conv_block, stride=1,
                                   compute_dtype=jnp.float32, row_tile=5))
    o1 = jax.block_until_ready(f1(*params))
    assert o1.shape == (N, out_channels, H, W), o1.shape
    assert jnp.allclose(o1, ref1, atol=1e-4, rtol=1e-4), \
        float(jnp.max(jnp.abs(o1 - ref1)))

    # 2) bf16 fast path (default auto tiling): loose tolerance for bf16 rounding.
    f2 = jax.jit(functools.partial(enhanced_conv_block, stride=1))
    o2 = jax.block_until_ready(f2(*params))
    assert o2.shape == (N, out_channels, H, W), o2.shape
    assert jnp.allclose(o2, ref1, atol=5e-2, rtol=5e-2), \
        float(jnp.max(jnp.abs(o2 - ref1)))

    # 3) f32 compute, stride=2: exercises the stride-phase decimation path.
    ref3 = _reference(*params, stride=2)
    f3 = jax.jit(functools.partial(enhanced_conv_block, stride=2,
                                   compute_dtype=jnp.float32, row_tile=3))
    o3 = jax.block_until_ready(f3(*params))
    assert o3.shape == ref3.shape, (o3.shape, ref3.shape)
    assert jnp.allclose(o3, ref3, atol=1e-4, rtol=1e-4), \
        float(jnp.max(jnp.abs(o3 - ref3)))

    print("KERNEL_OK")
</pallas_src>

<mosaic_0001>
module attributes {stable_mosaic.version = 11 : i64} {
  func.func @_conv_bn_relu_kernel(%arg0: i32, %arg1: i32, %arg2: memref<1x1x1x112x12xf32, #tpu.memory_space<vmem>>, %arg3: memref<3x12x128xf32, #tpu.memory_space<vmem>>, %arg4: memref<1x128xf32, #tpu.memory_space<vmem>>, %arg5: memref<1x1x80x128xf32, #tpu.memory_space<vmem>>) attributes {dimension_semantics = [#tpu.dimension_semantics<parallel>, #tpu.dimension_semantics<parallel>], iteration_bounds = array<i64: 2, 4>, scalar_prefetch = 0 : i64, scratch_operands = 0 : i64, tpu.core_type = #tpu.core_type<tc>, window_params = [{transform_indices = @transform_0, window_bounds = array<i64: 1, 1, 1, 112, 12>}, {pipeline_mode = #tpu.pipeline_mode<synchronous>, transform_indices = @transform_1, window_bounds = array<i64: 3, 12, 128>}, {pipeline_mode = #tpu.pipeline_mode<synchronous>, transform_indices = @transform_2, window_bounds = array<i64: 1, 128>}, {transform_indices = @transform_3, window_bounds = array<i64: 1, 1, 80, 128>}]} {
    %cst = arith.constant 0.000000e+00 : f32
    %0 = vector.broadcast %cst : f32 to vector<80x128xf32>
    %c0 = arith.constant 0 : index
    %c0_0 = arith.constant 0 : index
    %c0_1 = arith.constant 0 : index
    %c0_2 = arith.constant 0 : index
    %c0_3 = arith.constant 0 : index
    %1 = vector.load %arg2[%c0, %c0_0, %c0_1, %c0_2, %c0_3] : memref<1x1x1x112x12xf32, #tpu.memory_space<vmem>>, vector<1x1x1x80x12xf32>
    %2 = vector.shape_cast %1 : vector<1x1x1x80x12xf32> to vector<80x12xf32>
    %c0_4 = arith.constant 0 : index
    %c0_5 = arith.constant 0 : index
    %c0_6 = arith.constant 0 : index
    %3 = vector.load %arg3[%c0_4, %c0_5, %c0_6] : memref<3x12x128xf32, #tpu.memory_space<vmem>>, vector<1x12x128xf32>
    %4 = vector.shape_cast %3 : vector<1x12x128xf32> to vector<12x128xf32>
    %cst_7 = arith.constant dense<0.000000e+00> : vector<80x128xf32>
    %5 = tpu.matmul %2, %4, %cst_7 {dimension_numbers = #tpu.dot_dimension_numbers<[1], [0], [0], [1], [0, 0, 1, 1], [], []>} : vector<80x12xf32>, vector<12x128xf32>, vector<80x128xf32> -> vector<80x128xf32>
    %6 = arith.addf %0, %5 : vector<80x128xf32>
    %c0_8 = arith.constant 0 : index
    %c0_9 = arith.constant 0 : index
    %c0_10 = arith.constant 0 : index
    %c16 = arith.constant 16 : index
    %c0_11 = arith.constant 0 : index
    %7 = vector.load %arg2[%c0_8, %c0_9, %c0_10, %c16, %c0_11] : memref<1x1x1x112x12xf32, #tpu.memory_space<vmem>>, vector<1x1x1x80x12xf32>
    %8 = vector.shape_cast %7 : vector<1x1x1x80x12xf32> to vector<80x12xf32>
    %c1 = arith.constant 1 : index
    %c0_12 = arith.constant 0 : index
    %c0_13 = arith.constant 0 : index
    %9 = vector.load %arg3[%c1, %c0_12, %c0_13] : memref<3x12x128xf32, #tpu.memory_space<vmem>>, vector<1x12x128xf32>
    %10 = vector.shape_cast %9 : vector<1x12x128xf32> to vector<12x128xf32>
    %cst_14 = arith.constant dense<0.000000e+00> : vector<80x128xf32>
    %11 = tpu.matmul %8, %10, %cst_14 {dimension_numbers = #tpu.dot_dimension_numbers<[1], [0], [0], [1], [0, 0, 1, 1], [], []>} : vector<80x12xf32>, vector<12x128xf32>, vector<80x128xf32> -> vector<80x128xf32>
    %12 = arith.addf %6, %11 : vector<80x128xf32>
    %c0_15 = arith.constant 0 : index
    %c0_16 = arith.constant 0 : index
    %c0_17 = arith.constant 0 : index
    %c32 = arith.constant 32 : index
    %c0_18 = arith.constant 0 : index
    %13 = vector.load %arg2[%c0_15, %c0_16, %c0_17, %c32, %c0_18] : memref<1x1x1x112x12xf32, #tpu.memory_space<vmem>>, vector<1x1x1x80x12xf32>
    %14 = vector.shape_cast %13 : vector<1x1x1x80x12xf32> to vector<80x12xf32>
    %c2 = arith.constant 2 : index
    %c0_19 = arith.constant 0 : index
    %c0_20 = arith.constant 0 : index
    %15 = vector.load %arg3[%c2, %c0_19, %c0_20] : memref<3x12x128xf32, #tpu.memory_space<vmem>>, vector<1x12x128xf32>
    %16 = vector.shape_cast %15 : vector<1x12x128xf32> to vector<12x128xf32>
    %cst_21 = arith.constant dense<0.000000e+00> : vector<80x128xf32>
    %17 = tpu.matmul %14, %16, %cst_21 {dimension_numbers = #tpu.dot_dimension_numbers<[1], [0], [0], [1], [0, 0, 1, 1], [], []>} : vector<80x12xf32>, vector<12x128xf32>, vector<80x128xf32> -> vector<80x128xf32>
    %18 = arith.addf %12, %17 : vector<80x128xf32>
    %c0_22 = arith.constant 0 : index
    %c0_23 = arith.constant 0 : index
    %19 = vector.load %arg4[%c0_22, %c0_23] : memref<1x128xf32, #tpu.memory_space<vmem>>, vector<1x128xf32>
    %20 = vector.broadcast %19 : vector<1x128xf32> to vector<80x128xf32>
    %21 = arith.addf %18, %20 : vector<80x128xf32>
    %cst_24 = arith.constant 0.000000e+00 : f32
    %22 = vector.broadcast %cst_24 : f32 to vector<80x128xf32>
    %23 = arith.maximumf %21, %22 : vector<80x128xf32>
    %c0_25 = arith.constant 0 : index
    %c0_26 = arith.constant 0 : index
    %c0_27 = arith.constant 0 : index
    %c0_28 = arith.constant 0 : index
    %24 = vector.load %arg5[%c0_25, %c0_26, %c0_27, %c0_28] : memref<1x1x80x128xf32, #tpu.memory_space<vmem>>, vector<1x1x80x128xf32>
    %25 = vector.shape_cast %24 : vector<1x1x80x128xf32> to vector<80x128xf32>
    %26 = vector.shape_cast %23 : vector<80x128xf32> to vector<1x1x80x128xf32>
    tpu.vector_store %arg5[%c0_25, %c0_26, %c0_27, %c0_28], %26 {strides = array<i32>} : memref<1x1x80x128xf32, #tpu.memory_space<vmem>>, vector<1x1x80x128xf32>,
    return
  }
  func.func @transform_0(%arg0: i32, %arg1: i32) -> (i32, i32, i32, i32, i32) {
    %c0_i32 = arith.constant 0 : i32
    %c0_i32_0 = arith.constant 0 : i32
    %c0_i32_1 = arith.constant 0 : i32
    %c0_i32_2 = arith.constant 0 : i32
    return %arg0, %arg1, %c0_i32, %c0_i32_0, %c0_i32_1 : i32, i32, i32, i32, i32
  }
  func.func @transform_1(%arg0: i32, %arg1: i32) -> (i32, i32, i32) {
    %c0_i32 = arith.constant 0 : i32
    %c0_i32_0 = arith.constant 0 : i32
    %c0_i32_1 = arith.constant 0 : i32
    %c0_i32_2 = arith.constant 0 : i32
    return %c0_i32, %c0_i32_0, %c0_i32_1 : i32, i32, i32
  }
  func.func @transform_2(%arg0: i32, %arg1: i32) -> (i32, i32) {
    %c0_i32 = arith.constant 0 : i32
    %c0_i32_0 = arith.constant 0 : i32
    %c0_i32_1 = arith.constant 0 : i32
    return %c0_i32, %c0_i32_0 : i32, i32
  }
  func.func @transform_3(%arg0: i32, %arg1: i32) -> (i32, i32, i32, i32) {
    %c0_i32 = arith.constant 0 : i32
    %c0_i32_0 = arith.constant 0 : i32
    %c0_i32_1 = arith.constant 0 : i32
    return %arg0, %arg1, %c0_i32, %c0_i32_0 : i32, i32, i32, i32
  }
}

</mosaic_0001>

<bundles_post_ra>
// kernel: enhanced_conv_block.1
= control target key start
LH: loop header
LB: loop body
LE: loop exit
PB: predicated region body
PF: predicated region fallthrough
CT: control target
= control target key end

     0   :  { %s751_s12 = smov 0   ;;  %s753_s13 = smov 0   ;;  %s914_s0 = inlined_call_operand.vmem [shape: f32[2,4,1,112,12], index: 0, kind: input, shape index: {}]   ;;  %s915_s1 = inlined_call_operand.vmem [shape: f32[3,12,128], index: 1, kind: input, shape index: {}]   ;;  %s916_s2 = inlined_call_operand.vmem [shape: f32[1,128], index: 2, kind: input, shape index: {}]   ;;  %s917_s3 = inlined_call_operand.vmem [shape: f32[2,4,80,128], index: 3, kind: output, shape index: {}]  }
   0x1   :  { %s755_s14 = smov 0   ;;  %s757_s15 = smov 0  }
   0x2   :  { %s759_s16 = smov 0  }
   0x3 LB: > { %s22_s17 = sadd.s32 1, %s721_s14  ;;  %s25_s18 = sadd.s32 1, %s725_s15  ;;  %s729_s16 = sphi %s759_s16, %s13_s16   ;;  %s725_s15 = sphi %s757_s15, %s921_s15   ;;  %s721_s14 = sphi %s755_s14, %s920_s14   ;;  %s717_s13 = sphi %s753_s13, %s919_s13   ;;  %s713_s12 = sphi %s751_s12, %s918_s12  }
   0x4   : > { %p23_p0 = scmp.ge.s32.totalorder %s22_s17, 4  ;;  %p598_p1 = scmp.ge.s32.totalorder %s729_s16, 1 }
   0x5   : > { %p157_p2 = scmp.lt.s32.totalorder %s729_s16, 9 }
   0x6   : > { %s923_s17 = smov (%p23_p0, %s22_s17), 0  ;;  %s925_s18 = smov (!%p23_p0, %s25_s18), %s725_s15 }
   0x7   : > { %p158_p3 = pnand %p598_p1, %p157_p2  ;;  %p27_p4 = scmp.ge.s32.totalorder %s925_s18, 2 }
   0x8   : > { %p189_p5 = scmp.lt.s32.totalorder (!%p158_p3), %s717_s13, 1  ;;  %p191_p6 = scmp.lt.s32.totalorder (!%p158_p3), %s713_s12, 3 }
   0x9   : > { %s927_s18 = smov (%p27_p4, %s925_s18), 0  ;;  %161 = sbr.rel (%p158_p3) target bundleno = 218 (0xda), region = 32 }
   0xe   : > { %v602_v0 = vld [vmem:[%s915_s1 + $0x18] sm:$0xf]  ;;  %vm255_vm0 = vcmask 1043456   ;;  %v626_v1 = vld [vmem:[%s915_s1 + $0x28] sm:$0xf]  ;;  %v601_v2 = vld [vmem:[%s915_s1 + $0x10] sm:$0xff] }
   0xf   : > { %640 = vmatpush.msk.msra.mxu3 %vm255_vm0, %v602_v0  ;;  %627 = vmatpush.msk.msra.mxu2 %vm255_vm0, %v626_v1  ;;  %v625_v3 = vld [vmem:[%s915_s1 + $0x20] sm:$0xff]  ;;  %v218_v4 = vld [vmem:[%s915_s1 + $0x8] sm:$0xf]  ;;  %s929_s13 = smov (!%p189_p5, %s717_s13), 1  ;;  %s931_s12 = smov (!%p191_p6, %s713_s12), 3  ;;  %vm224_vm1 = vcmask 97280  }
  0x10   : > { %603 = vmatpush.msk.msra.mxu0 %vm255_vm0, %v602_v0  ;;  %614 = vmatpush.msk.msra.mxu1 %vm255_vm0, %v218_v4  ;;  %v217_v5 = vld [vmem:[%s915_s1] sm:$0xff]  ;;  %s647_s4 = smul.u32 56, %s929_s13 }
  0x11   : > { %641 = vmatpush.msra.mxu3 %v601_v2  ;;  %423 = vmatpush.msra.mxu2 %v625_v3  ;;  %s646_s5 = smul.u32 14, %s931_s12  ;;  %v871_v23 = vld [vmem:[%s916_s2] ss:$0 sm:$0xff] }
  0x12   : > { %274 = vmatpush.msra.mxu0 %v601_v2  ;;  %330 = vmatpush.msra.mxu1 %v217_v5  ;;  %s648_s11 = smul.u32 10, %s931_s12 }
  0x13   : > { %642 = vmatpush.msk.msrb.mxu3 %vm255_vm0, %v218_v4  ;;  %s195_s6 = sadd.s32 %s647_s4, %s646_s5  ;;  %s649_s19 = smul.u32 40, %s929_s13 }
  0x14   : > { %s599_s7 = sshll.u32 %s195_s6, 3 }
  0x15   : > { %643 = vmatpush.msrb.mxu3 %v217_v5  ;;  %s818_s10 = scalar_lea.vmem %s914_s0, %s599_s7  ;;  %s834_s20 = sadd.s32 %s649_s19, %s648_s11 }
  0x16   : > { %v219_v6 = vld [vmem:[%s818_s10 + $0x50] sm:$0xff]  ;;  %v362_v7 = vld [vmem:[%s818_s10 + $0x20] sm:$0xff]  ;;  %v220_v10 = vld [vmem:[%s818_s10 + $0x58] sm:$0xff]  ;;  %s600_s21 = sshll.u32 %s834_s20, 3 }
  0x17   : > { %v209_v8 = vld [vmem:[%s818_s10 + $0x10] sm:$0xff]  ;;  %612 = vmatmul.msk.f32.vlgmr.msra.gmra.mxu3 %vm224_vm1, %v219_v6  ;;  %628 = vmatmul.msk.f32.vlgmr.msra.gmra.mxu2 %vm224_vm1, %v362_v7  ;;  %v207_v9 = vld [vmem:[%s818_s10] sm:$0xff]  ;;  %v363_v11 = vld [vmem:[%s818_s10 + $0x28] sm:$0xff]  ;;  %s878_s24 = scalar_lea.vmem %s917_s3, %s600_s21 }
  0x18   : > { %604 = vmatmul.msk.f32.vlgmr.msra.gmra.mxu0 %vm224_vm1, %v209_v8  ;;  %615 = vmatmul.msk.f32.vlgmr.msra.gmra.mxu1 %vm224_vm1, %v207_v9  ;;  %v210_v12 = vld [vmem:[%s818_s10 + $0x18] sm:$0xff]  ;;  %v208_v13 = vld [vmem:[%s818_s10 + $0x8] sm:$0xff]  ;;  %v215_v14 = vld [vmem:[%s818_s10 + $0x40] sm:$0xff] }
  0x19   : > { %644 = vmatpush.msk.msra.mxu3 %vm255_vm0, %v626_v1  ;;  %v364_v15 = vld [vmem:[%s818_s10 + $0x30] sm:$0xff]  ;;  %v216_v16 = vld [vmem:[%s818_s10 + $0x48] sm:$0xff]  ;;  %v365_v17 = vld [vmem:[%s818_s10 + $0x38] sm:$0xff] }
  0x1a   : > { %v370_v18 = vld [vmem:[%s818_s10 + $0x60] sm:$0xff]  ;;  %v371_v19 = vld [vmem:[%s818_s10 + $0x68] sm:$0xff] }
  0x1b   : > { %645 = vmatpush.msra.mxu3 %v625_v3 }
  0x1f   : > { %613 = vmatmul.msk.f32.gmra.mxu3 %vm224_vm1, %v220_v10  ;;  %629 = vmatmul.msk.f32.gmra.mxu2 %vm224_vm1, %v363_v11 }
  0x20   : > { %605 = vmatmul.msk.f32.gmra.mxu0 %vm224_vm1, %v210_v12  ;;  %616 = vmatmul.msk.f32.gmra.mxu1 %vm224_vm1, %v208_v13 }
  0x27   : > { %623 = vmatmul.msk.f32.vlgmr.msrb.gmra.mxu3 %vm224_vm1, %v215_v14  ;;  %630 = vmatmul.msk.f32.gmra.mxu2 %vm224_vm1, %v364_v15 }
  0x28   : > { %606 = vmatmul.msk.f32.gmra.mxu0 %vm224_vm1, %v362_v7  ;;  %617 = vmatmul.msk.f32.gmra.mxu1 %vm224_vm1, %v209_v8 }
  0x2f   : > { %624 = vmatmul.msk.f32.gmra.mxu3 %vm224_vm1, %v216_v16  ;;  %631 = vmatmul.msk.f32.gmra.mxu2 %vm224_vm1, %v365_v17 }
  0x30   : > { %607 = vmatmul.msk.f32.gmra.mxu0 %vm224_vm1, %v363_v11  ;;  %618 = vmatmul.msk.f32.gmra.mxu1 %vm224_vm1, %v210_v12 }
  0x37   : > { %632 = vmatmul.msk.f32.gmra.mxu2 %vm224_vm1, %v215_v14  ;;  %636 = vmatmul.msk.f32.vlgmr.msra.gmra.mxu3 %vm224_vm1, %v370_v18 }
  0x38   : > { %608 = vmatmul.msk.f32.gmra.mxu0 %vm224_vm1, %v364_v15  ;;  %619 = vmatmul.msk.f32.gmra.mxu1 %vm224_vm1, %v362_v7 }
  0x3f   : > { %633 = vmatmul.msk.f32.gmra.mxu2 %vm224_vm1, %v216_v16  ;;  %637 = vmatmul.msk.f32.gmra.mxu3 %vm224_vm1, %v371_v19 }
  0x40   : > { %609 = vmatmul.msk.f32.gmra.mxu0 %vm224_vm1, %v365_v17  ;;  %620 = vmatmul.msk.f32.gmra.mxu1 %vm224_vm1, %v363_v11 }
  0x47   : > { %634 = vmatmul.msk.f32.gmra.mxu2 %vm224_vm1, %v219_v6 }
  0x48   : > { %610 = vmatmul.msk.f32.gmra.mxu0 %vm224_vm1, %v215_v14  ;;  %621 = vmatmul.msk.f32.gmra.mxu1 %vm224_vm1, %v364_v15 }
  0x4f   : > { %635 = vmatmul.msk.f32.gmra.mxu2 %vm224_vm1, %v220_v10 }
  0x50   : > { %611 = vmatmul.msk.f32.gmra.mxu0 %vm224_vm1, %v216_v16  ;;  %622 = vmatmul.msk.f32.gmra.mxu1 %vm224_vm1, %v365_v17 }
  0x95   : > { %v276_v20 = vpop.f32.mrf.mxu0  ;;  %v332_v21 = vpop.f32.mrf.mxu1 }
  0x96   : > { %v333_v22 = vadd.f32 %v332_v21, %v276_v20 }
  0x9a   : > { %v300_v24 = vpop.f32.mrf.mxu3  ;;  %v425_v25 = vpop.f32.mrf.mxu2 }
  0x9b   : > { %v455_v26 = vadd.f32 %v425_v25, %v333_v22 }
  0x9d   : > { %v469_v27 = vadd.f32 %v871_v23, %v455_v26  ;;  %v279_v28 = vpop.f32.mrf.mxu0  ;;  %v335_v29 = vpop.f32.mrf.mxu1 }
  0x9e   : > { %v336_v31 = vadd.f32 %v335_v29, %v279_v28 }
  0x9f   : > { %v479_v30 = vmax.f32 %v469_v27, 0.0 }
  0xa1   : > { %489 = vst [vmem:[%s878_s24] sm:$0xff] %v479_v30 }
  0xa2   : > { %v303_v32 = vpop.f32.mrf.mxu3  ;;  %v428_v33 = vpop.f32.mrf.mxu2 }
  0xa3   : > { %v456_v34 = vadd.f32 %v428_v33, %v336_v31 }
  0xa5   : > { %v470_v35 = vadd.f32 %v871_v23, %v456_v34  ;;  %v282_v36 = vpop.f32.mrf.mxu0  ;;  %v338_v37 = vpop.f32.mrf.mxu1 }
  0xa6   : > { %v339_v39 = vadd.f32 %v338_v37, %v282_v36 }
  0xa7   : > { %v480_v38 = vmax.f32 %v470_v35, 0.0 }
  0xa9   : > { %490 = vst [vmem:[%s878_s24 + $0x8] sm:$0xff] %v480_v38 }
  0xaa   : > { %v356_v40 = vpop.f32.mrf.mxu3  ;;  %v431_v41 = vpop.f32.mrf.mxu2 }
  0xab   : > { %v457_v42 = vadd.f32 %v431_v41, %v339_v39  ;;  %v357_v56 = vadd.f32 %v356_v40, %v300_v24 }
  0xad   : > { %v471_v43 = vadd.f32 %v871_v23, %v457_v42  ;;  %v285_v44 = vpop.f32.mrf.mxu0  ;;  %v341_v45 = vpop.f32.mrf.mxu1 }
  0xae   : > { %v342_v47 = vadd.f32 %v341_v45, %v285_v44 }
  0xaf   : > { %v481_v46 = vmax.f32 %v471_v43, 0.0 }
  0xb1   : > { %491 = vst [vmem:[%s878_s24 + $0x10] sm:$0xff] %v481_v46 }
  0xb2   : > { %v359_v48 = vpop.f32.mrf.mxu3  ;;  %v434_v49 = vpop.f32.mrf.mxu2 }
  0xb3   : > { %v458_v50 = vadd.f32 %v434_v49, %v342_v47  ;;  %v360_v4 = vadd.f32 %v359_v48, %v303_v32 }
  0xb5   : > { %v472_v51 = vadd.f32 %v871_v23, %v458_v50  ;;  %v288_v52 = vpop.f32.mrf.mxu0  ;;  %v344_v53 = vpop.f32.mrf.mxu1 }
  0xb6   : > { %v345_v55 = vadd.f32 %v344_v53, %v288_v52 }
  0xb7   : > { %v482_v54 = vmax.f32 %v472_v51, 0.0 }
  0xb9   : > { %492 = vst [vmem:[%s878_s24 + $0x18] sm:$0xff] %v482_v54 }
  0xba   : > { %v437_v57 = vpop.f32.mrf.mxu2  ;;  %v449_v58 = vpop.f32.mrf.mxu3 }
  0xbb   : > { %v459_v59 = vadd.f32 %v437_v57, %v345_v55  ;;  %v463_v60 = vadd.f32 %v449_v58, %v357_v56 }
  0xbd   : > { %v473_v61 = vadd.f32 %v871_v23, %v459_v59  ;;  %v477_v62 = vadd.f32 %v871_v23, %v463_v60  ;;  %v291_v63 = vpop.f32.mrf.mxu0  ;;  %v347_v0 = vpop.f32.mrf.mxu1 }
  0xbe   : > { %v348_v3 = vadd.f32 %v347_v0, %v291_v63 }
  0xbf   : > { %v483_v1 = vmax.f32 %v473_v61, 0.0  ;;  %v487_v2 = vmax.f32 %v477_v62, 0.0 }
  0xc1   : > { %493 = vst [vmem:[%s878_s24 + $0x20] sm:$0xff] %v483_v1 }
  0xc2   : > { %497 = vst [vmem:[%s878_s24 + $0x40] sm:$0xff] %v487_v2  ;;  %v440_v5 = vpop.f32.mrf.mxu2  ;;  %v452_v6 = vpop.f32.mrf.mxu3 }
  0xc3   : > { %v460_v7 = vadd.f32 %v440_v5, %v348_v3  ;;  %v464_v8 = vadd.f32 %v452_v6, %v360_v4 }
  0xc5   : > { %v474_v9 = vadd.f32 %v871_v23, %v460_v7  ;;  %v478_v10 = vadd.f32 %v871_v23, %v464_v8  ;;  %v294_v11 = vpop.f32.mrf.mxu0  ;;  %v350_v12 = vpop.f32.mrf.mxu1 }
  0xc6   : > { %v351_v15 = vadd.f32 %v350_v12, %v294_v11 }
  0xc7   : > { %v484_v13 = vmax.f32 %v474_v9, 0.0  ;;  %v488_v14 = vmax.f32 %v478_v10, 0.0 }
  0xc9   : > { %494 = vst [vmem:[%s878_s24 + $0x28] sm:$0xff] %v484_v13 }
  0xca   : > { %498 = vst [vmem:[%s878_s24 + $0x48] sm:$0xff] %v488_v14  ;;  %v443_v16 = vpop.f32.mrf.mxu2 }
  0xcb   : > { %v461_v17 = vadd.f32 %v443_v16, %v351_v15 }
  0xcd   : > { %v475_v18 = vadd.f32 %v871_v23, %v461_v17  ;;  %v297_v19 = vpop.f32.mrf.mxu0  ;;  %v353_v20 = vpop.f32.mrf.mxu1 }
  0xce   : > { %v354_v22 = vadd.f32 %v353_v20, %v297_v19 }
  0xcf   : > { %v485_v21 = vmax.f32 %v475_v18, 0.0 }
  0xd1   : > { %495 = vst [vmem:[%s878_s24 + $0x30] sm:$0xff] %v485_v21 }
  0xd2   : > { %v446_v24 = vpop.f32.mrf.mxu2 }
  0xd3   : > { %v462_v25 = vadd.f32 %v446_v24, %v354_v22 }
  0xd5   : > { %v476_v26 = vadd.f32 %v871_v23, %v462_v25 }
  0xd7   : > { %v486_v27 = vmax.f32 %v476_v26, 0.0 }
  0xd9   : > { %496 = vst [vmem:[%s878_s24 + $0x38] sm:$0xff] %v486_v27 }
  0xda PF: > { %s13_s16 = sadd.s32 1, %s729_s16   ;;  %s918_s12 = smov %s721_s14 }
  0xdb   : > { %p10_p7 = scmp.ge.s32.totalorder %s13_s16, 10   ;;  %s919_s13 = smov %s725_s15 }
  0xdc   : > { %s920_s14 = smov %s923_s17  ;;  %s921_s15 = smov %s927_s18 }
  0xdd   :  { %12 = sbr.rel (!%p10_p7) target bundleno = 3 (0x3), region = 64 }

</bundles_post_ra>
